<compile_context>
chip_gen: v6e
topology: v6e:2x2x1
jax: 0.10.0
libtpu: 0.0.40
codegen_flags: <defaults>
</compile_context>

<pallas_src>
import functools

import jax
import jax.numpy as jnp
import numpy as np
from jax.experimental import pallas as pl
from jax.experimental.pallas import tpu as pltpu

LANE = 128     # TPU lane width (last-dim tiling)


def _round_up(v, m):
    return (v + m - 1) // m * m


# ----------------------------- fused Pallas kernel ---------------------------

def _make_fused_kernel(n_layers, in_dim):
    def kernel(x_ref, w_ref, b_ref, lin_ref, act_ref):
        # x_ref:   [B, in_dim]   raw (un-padded) input activations
        # w_ref:   [L, F, F]     zero-padded weights, stored [in, out]
        # b_ref:   [L, 1, F]     zero-padded biases
        # lin_ref: [L, B, F]     pre-activation (nn.Linear output) of every layer
        # act_ref: [L-1, B, F]   ReLU output of every hidden layer
        #
        # First layer: consume only the first `in_dim` weight rows so the raw
        # input never needs a wrapper-side zero-pad (extra output cols of w are
        # zero, so the padded lanes of y are exactly bias+0 and get sliced off
        # in the wrapper).
        h = x_ref[...]
        y = jnp.dot(h, w_ref[0, :in_dim, :], preferred_element_type=jnp.float32)
        y = y + b_ref[0]
        lin_ref[0] = y.astype(lin_ref.dtype)
        # Static unroll over the remaining layers (keeps LLO scheduler visibility;
        # vreg pressure is low, no spill risk at F=128).
        for l in range(1, n_layers):
            h = jnp.maximum(y, 0.0)                     # ReLU feeding layer l
            act_ref[l - 1] = h.astype(act_ref.dtype)    # lane-dense store, ~free vst
            y = jnp.dot(h, w_ref[l], preferred_element_type=jnp.float32)
            y = y + b_ref[l]
            lin_ref[l] = y.astype(lin_ref.dtype)
    return kernel


def _fused_linear_stack(x, w_stack, b_stack):
    """One pallas_call for the whole MLP.

    Everything is whole-array VMEM resident (~0.36 MiB total), which fits
    trivially on v5e/v6e/v7x.  Scaling guard: if n_layers*F*F*4B ever
    approaches the scoped-VMEM default (esp. v7x's 64 MiB physical), switch
    w/b/lin/act to per-layer BlockSpecs over grid=(n_layers,) with
    pipeline_mode=pl.Buffered(2) and raise vmem_limit_bytes — not worth it at
    F=128 where per-grid-step overhead would exceed the hidden DMA.
    """
    n_layers, F, _ = w_stack.shape
    B, in_dim = x.shape
    flops = 2 * B * F * (in_dim + (n_layers - 1) * F)
    bytes_accessed = 4 * (x.size + w_stack.size + b_stack.size
                          + (2 * n_layers - 1) * B * F)
    vmem_spec = pl.BlockSpec(memory_space=pltpu.MemorySpace.VMEM)
    return pl.pallas_call(
        _make_fused_kernel(n_layers, in_dim),
        out_shape=(jax.ShapeDtypeStruct((n_layers, B, F), jnp.float32),
                   jax.ShapeDtypeStruct((n_layers - 1, B, F), jnp.float32)),
        in_specs=[vmem_spec, vmem_spec, vmem_spec],
        out_specs=(vmem_spec, vmem_spec),
        cost_estimate=pl.CostEstimate(
            flops=flops, transcendentals=0, bytes_accessed=bytes_accessed),
    )(x, w_stack, b_stack)


# --------------------------- parameter packing -------------------------------

def init_params(key, input_size, output_size, num_hidden_layer, hidden_size):
    """Deterministic, PyTorch-like uniform init; weights stored [in, out]."""
    params = []
    in_f = input_size
    for _ in range(num_hidden_layer):
        key, k_w, k_b = jax.random.split(key, 3)
        bound = 1.0 / float(np.sqrt(in_f))
        w = jax.random.uniform(k_w, (in_f, hidden_size), jnp.float32, -bound, bound)
        b = jax.random.uniform(k_b, (1, hidden_size), jnp.float32, -bound, bound)
        params.append((w, b))
        in_f = hidden_size
    key, k_w, k_b = jax.random.split(key, 3)
    bound = 1.0 / float(np.sqrt(in_f))
    w = jax.random.uniform(k_w, (in_f, output_size), jnp.float32, -bound, bound)
    b = jax.random.uniform(k_b, (1, output_size), jnp.float32, -bound, bound)
    params.append((w, b))
    return params


def prepare_packed_params(params):
    """Zero-pad every layer to a common [F, F] tile (F = lane-rounded max width)
    and stack; padding rows/cols are zero so the fused math stays exact."""
    dims = [params[0][0].shape[0]] + [w.shape[1] for (w, _) in params]
    F = _round_up(max(dims), LANE)
    n_layers = len(params)
    w_stack = jnp.zeros((n_layers, F, F), jnp.float32)
    b_stack = jnp.zeros((n_layers, 1, F), jnp.float32)
    for l, (w, b) in enumerate(params):
        k, o = w.shape
        w_stack = w_stack.at[l, :k, :o].set(w.astype(jnp.float32))
        b_stack = b_stack.at[l, 0, :o].set(b.reshape(-1).astype(jnp.float32))
    layer_dims = tuple(w.shape[1] for (w, _) in params)
    return w_stack, b_stack, layer_dims


# ------------------------ forward (mirrors NeuralNet04) ----------------------

@functools.partial(jax.jit, static_argnames=("layer_dims",))
def neuralnet04_forward(x, w_stack, b_stack, *, layer_dims):
    # NOTE: with batch=4 the matmuls feed only a handful of MXU rows; the call
    # is launch/dispatch bound — batch more rows per call (up to 128/256) for
    # throughput, or add a grid axis over repeated inputs to amortize launch.
    x = x.astype(jnp.float32)
    lin_slab, act_slab = _fused_linear_stack(x, w_stack, b_stack)

    # Rebuild hidden_state exactly as the PyTorch module does:
    # [fc_1, activation_1, fc_2, activation_2, ..., fc_N, activation_N, out_layer]
    # Both slabs come straight from the kernel; the wrapper only slices off the
    # zero-padded feature lanes (no recomputation).
    hidden_state = []
    n_layers = len(layer_dims)
    for l in range(n_layers - 1):
        o = layer_dims[l]
        hidden_state.append(lin_slab[l, :, :o])
        hidden_state.append(act_slab[l, :, :o])
    out = lin_slab[n_layers - 1, :, :layer_dims[-1]]
    hidden_state.append(out)
    return out, hidden_state


def _reference_forward(params, x):
    hidden_state = []
    inputs = x
    for (w, b) in params[:-1]:
        lin = inputs @ w + b
        act = jnp.maximum(lin, 0.0)
        hidden_state.append(lin)
        hidden_state.append(act)
        inputs = act
    w, b = params[-1]
    out = inputs @ w + b
    hidden_state.append(out)
    return out, hidden_state


if __name__ == "__main__":
    batch = 4
    input_size = 32
    hidden_size = 128
    output_size = 16
    num_hidden_layer = 4

    key = jax.random.PRNGKey(0)
    key, k_x = jax.random.split(key)
    x = jax.random.normal(k_x, (batch, input_size), jnp.float32)
    params = init_params(key, input_size, output_size, num_hidden_layer, hidden_size)

    # TODO(synk): only the 'rRelu' (nn.ReLU) branch of the ModuleDict is
    # implemented; the unused 'pRelu' (learnable PReLU) option is not translated.
    w_stack, b_stack, layer_dims = prepare_packed_params(params)

    out, hidden_state = neuralnet04_forward(x, w_stack, b_stack, layer_dims=layer_dims)
    out = jax.block_until_ready(out)
    hidden_state = [jax.block_until_ready(h) for h in hidden_state]

    # sanity check against pure-JAX reference
    ref_out, ref_hidden = _reference_forward(params, x)
    assert len(hidden_state) == 2 * num_hidden_layer + 1
    np.testing.assert_allclose(np.asarray(out), np.asarray(ref_out), rtol=1e-5, atol=1e-5)
    for h, rh in zip(hidden_state, ref_hidden):
        np.testing.assert_allclose(np.asarray(h), np.asarray(rh), rtol=1e-5, atol=1e-5)

    print("KERNEL_OK")
</pallas_src>

<mosaic_0001>
module attributes {stable_mosaic.version = 11 : i64} {
  func.func @kernel(%arg0: memref<4x32xf32, #tpu.memory_space<vmem>>, %arg1: memref<5x128x128xf32, #tpu.memory_space<vmem>>, %arg2: memref<5x1x128xf32, #tpu.memory_space<vmem>>, %arg3: memref<5x4x128xf32, #tpu.memory_space<vmem>>, %arg4: memref<4x4x128xf32, #tpu.memory_space<vmem>>) attributes {dimension_semantics = [], scalar_prefetch = 0 : i64, scratch_operands = 0 : i64, tpu.core_type = #tpu.core_type<tc>} {
    %c0 = arith.constant 0 : index
    %c0_0 = arith.constant 0 : index
    %0 = vector.load %arg0[%c0, %c0_0] : memref<4x32xf32, #tpu.memory_space<vmem>>, vector<4x32xf32>
    %c0_1 = arith.constant 0 : index
    %c0_2 = arith.constant 0 : index
    %c0_3 = arith.constant 0 : index
    %1 = vector.load %arg1[%c0_1, %c0_2, %c0_3] : memref<5x128x128xf32, #tpu.memory_space<vmem>>, vector<1x32x128xf32>
    %2 = vector.shape_cast %1 : vector<1x32x128xf32> to vector<32x128xf32>
    %cst = arith.constant dense<0.000000e+00> : vector<4x128xf32>
    %3 = tpu.matmul %0, %2, %cst {dimension_numbers = #tpu.dot_dimension_numbers<[1], [0], [0], [1], [0, 0, 1, 1], [], []>} : vector<4x32xf32>, vector<32x128xf32>, vector<4x128xf32> -> vector<4x128xf32>
    %c0_4 = arith.constant 0 : index
    %c0_5 = arith.constant 0 : index
    %c0_6 = arith.constant 0 : index
    %4 = vector.load %arg2[%c0_4, %c0_5, %c0_6] : memref<5x1x128xf32, #tpu.memory_space<vmem>>, vector<1x1x128xf32>
    %5 = vector.shape_cast %4 : vector<1x1x128xf32> to vector<1x128xf32>
    %6 = vector.broadcast %5 : vector<1x128xf32> to vector<4x128xf32>
    %7 = arith.addf %3, %6 : vector<4x128xf32>
    %c0_7 = arith.constant 0 : index
    %c0_8 = arith.constant 0 : index
    %c0_9 = arith.constant 0 : index
    %8 = vector.load %arg3[%c0_7, %c0_8, %c0_9] : memref<5x4x128xf32, #tpu.memory_space<vmem>>, vector<1x4x128xf32>
    %9 = vector.shape_cast %8 : vector<1x4x128xf32> to vector<4x128xf32>
    %10 = vector.shape_cast %7 : vector<4x128xf32> to vector<1x4x128xf32>
    tpu.vector_store %arg3[%c0_7, %c0_8, %c0_9], %10 {strides = array<i32>} : memref<5x4x128xf32, #tpu.memory_space<vmem>>, vector<1x4x128xf32>,
    %cst_10 = arith.constant 0.000000e+00 : f32
    %11 = vector.broadcast %cst_10 : f32 to vector<4x128xf32>
    %12 = arith.maximumf %7, %11 : vector<4x128xf32>
    %c0_11 = arith.constant 0 : index
    %c0_12 = arith.constant 0 : index
    %c0_13 = arith.constant 0 : index
    %13 = vector.load %arg4[%c0_11, %c0_12, %c0_13] : memref<4x4x128xf32, #tpu.memory_space<vmem>>, vector<1x4x128xf32>
    %14 = vector.shape_cast %13 : vector<1x4x128xf32> to vector<4x128xf32>
    %15 = vector.shape_cast %12 : vector<4x128xf32> to vector<1x4x128xf32>
    tpu.vector_store %arg4[%c0_11, %c0_12, %c0_13], %15 {strides = array<i32>} : memref<4x4x128xf32, #tpu.memory_space<vmem>>, vector<1x4x128xf32>,
    %c1 = arith.constant 1 : index
    %c0_14 = arith.constant 0 : index
    %c0_15 = arith.constant 0 : index
    %16 = vector.load %arg1[%c1, %c0_14, %c0_15] : memref<5x128x128xf32, #tpu.memory_space<vmem>>, vector<1x128x128xf32>
    %17 = vector.shape_cast %16 : vector<1x128x128xf32> to vector<128x128xf32>
    %cst_16 = arith.constant dense<0.000000e+00> : vector<4x128xf32>
    %18 = tpu.matmul %12, %17, %cst_16 {dimension_numbers = #tpu.dot_dimension_numbers<[1], [0], [0], [1], [0, 0, 1, 1], [], []>} : vector<4x128xf32>, vector<128x128xf32>, vector<4x128xf32> -> vector<4x128xf32>
    %c1_17 = arith.constant 1 : index
    %c0_18 = arith.constant 0 : index
    %c0_19 = arith.constant 0 : index
    %19 = vector.load %arg2[%c1_17, %c0_18, %c0_19] : memref<5x1x128xf32, #tpu.memory_space<vmem>>, vector<1x1x128xf32>
    %20 = vector.shape_cast %19 : vector<1x1x128xf32> to vector<1x128xf32>
    %21 = vector.broadcast %20 : vector<1x128xf32> to vector<4x128xf32>
    %22 = arith.addf %18, %21 : vector<4x128xf32>
    %c1_20 = arith.constant 1 : index
    %c0_21 = arith.constant 0 : index
    %c0_22 = arith.constant 0 : index
    %23 = vector.load %arg3[%c1_20, %c0_21, %c0_22] : memref<5x4x128xf32, #tpu.memory_space<vmem>>, vector<1x4x128xf32>
    %24 = vector.shape_cast %23 : vector<1x4x128xf32> to vector<4x128xf32>
    %25 = vector.shape_cast %22 : vector<4x128xf32> to vector<1x4x128xf32>
    tpu.vector_store %arg3[%c1_20, %c0_21, %c0_22], %25 {strides = array<i32>} : memref<5x4x128xf32, #tpu.memory_space<vmem>>, vector<1x4x128xf32>,
    %cst_23 = arith.constant 0.000000e+00 : f32
    %26 = vector.broadcast %cst_23 : f32 to vector<4x128xf32>
    %27 = arith.maximumf %22, %26 : vector<4x128xf32>
    %c1_24 = arith.constant 1 : index
    %c0_25 = arith.constant 0 : index
    %c0_26 = arith.constant 0 : index
    %28 = vector.load %arg4[%c1_24, %c0_25, %c0_26] : memref<4x4x128xf32, #tpu.memory_space<vmem>>, vector<1x4x128xf32>
    %29 = vector.shape_cast %28 : vector<1x4x128xf32> to vector<4x128xf32>
    %30 = vector.shape_cast %27 : vector<4x128xf32> to vector<1x4x128xf32>
    tpu.vector_store %arg4[%c1_24, %c0_25, %c0_26], %30 {strides = array<i32>} : memref<4x4x128xf32, #tpu.memory_space<vmem>>, vector<1x4x128xf32>,
    %c2 = arith.constant 2 : index
    %c0_27 = arith.constant 0 : index
    %c0_28 = arith.constant 0 : index
    %31 = vector.load %arg1[%c2, %c0_27, %c0_28] : memref<5x128x128xf32, #tpu.memory_space<vmem>>, vector<1x128x128xf32>
    %32 = vector.shape_cast %31 : vector<1x128x128xf32> to vector<128x128xf32>
    %cst_29 = arith.constant dense<0.000000e+00> : vector<4x128xf32>
    %33 = tpu.matmul %27, %32, %cst_29 {dimension_numbers = #tpu.dot_dimension_numbers<[1], [0], [0], [1], [0, 0, 1, 1], [], []>} : vector<4x128xf32>, vector<128x128xf32>, vector<4x128xf32> -> vector<4x128xf32>
    %c2_30 = arith.constant 2 : index
    %c0_31 = arith.constant 0 : index
    %c0_32 = arith.constant 0 : index
    %34 = vector.load %arg2[%c2_30, %c0_31, %c0_32] : memref<5x1x128xf32, #tpu.memory_space<vmem>>, vector<1x1x128xf32>
    %35 = vector.shape_cast %34 : vector<1x1x128xf32> to vector<1x128xf32>
    %36 = vector.broadcast %35 : vector<1x128xf32> to vector<4x128xf32>
    %37 = arith.addf %33, %36 : vector<4x128xf32>
    %c2_33 = arith.constant 2 : index
    %c0_34 = arith.constant 0 : index
    %c0_35 = arith.constant 0 : index
    %38 = vector.load %arg3[%c2_33, %c0_34, %c0_35] : memref<5x4x128xf32, #tpu.memory_space<vmem>>, vector<1x4x128xf32>
    %39 = vector.shape_cast %38 : vector<1x4x128xf32> to vector<4x128xf32>
    %40 = vector.shape_cast %37 : vector<4x128xf32> to vector<1x4x128xf32>
    tpu.vector_store %arg3[%c2_33, %c0_34, %c0_35], %40 {strides = array<i32>} : memref<5x4x128xf32, #tpu.memory_space<vmem>>, vector<1x4x128xf32>,
    %cst_36 = arith.constant 0.000000e+00 : f32
    %41 = vector.broadcast %cst_36 : f32 to vector<4x128xf32>
    %42 = arith.maximumf %37, %41 : vector<4x128xf32>
    %c2_37 = arith.constant 2 : index
    %c0_38 = arith.constant 0 : index
    %c0_39 = arith.constant 0 : index
    %43 = vector.load %arg4[%c2_37, %c0_38, %c0_39] : memref<4x4x128xf32, #tpu.memory_space<vmem>>, vector<1x4x128xf32>
    %44 = vector.shape_cast %43 : vector<1x4x128xf32> to vector<4x128xf32>
    %45 = vector.shape_cast %42 : vector<4x128xf32> to vector<1x4x128xf32>
    tpu.vector_store %arg4[%c2_37, %c0_38, %c0_39], %45 {strides = array<i32>} : memref<4x4x128xf32, #tpu.memory_space<vmem>>, vector<1x4x128xf32>,
    %c3 = arith.constant 3 : index
    %c0_40 = arith.constant 0 : index
    %c0_41 = arith.constant 0 : index
    %46 = vector.load %arg1[%c3, %c0_40, %c0_41] : memref<5x128x128xf32, #tpu.memory_space<vmem>>, vector<1x128x128xf32>
    %47 = vector.shape_cast %46 : vector<1x128x128xf32> to vector<128x128xf32>
    %cst_42 = arith.constant dense<0.000000e+00> : vector<4x128xf32>
    %48 = tpu.matmul %42, %47, %cst_42 {dimension_numbers = #tpu.dot_dimension_numbers<[1], [0], [0], [1], [0, 0, 1, 1], [], []>} : vector<4x128xf32>, vector<128x128xf32>, vector<4x128xf32> -> vector<4x128xf32>
    %c3_43 = arith.constant 3 : index
    %c0_44 = arith.constant 0 : index
    %c0_45 = arith.constant 0 : index
    %49 = vector.load %arg2[%c3_43, %c0_44, %c0_45] : memref<5x1x128xf32, #tpu.memory_space<vmem>>, vector<1x1x128xf32>
    %50 = vector.shape_cast %49 : vector<1x1x128xf32> to vector<1x128xf32>
    %51 = vector.broadcast %50 : vector<1x128xf32> to vector<4x128xf32>
    %52 = arith.addf %48, %51 : vector<4x128xf32>
    %c3_46 = arith.constant 3 : index
    %c0_47 = arith.constant 0 : index
    %c0_48 = arith.constant 0 : index
    %53 = vector.load %arg3[%c3_46, %c0_47, %c0_48] : memref<5x4x128xf32, #tpu.memory_space<vmem>>, vector<1x4x128xf32>
    %54 = vector.shape_cast %53 : vector<1x4x128xf32> to vector<4x128xf32>
    %55 = vector.shape_cast %52 : vector<4x128xf32> to vector<1x4x128xf32>
    tpu.vector_store %arg3[%c3_46, %c0_47, %c0_48], %55 {strides = array<i32>} : memref<5x4x128xf32, #tpu.memory_space<vmem>>, vector<1x4x128xf32>,
    %cst_49 = arith.constant 0.000000e+00 : f32
    %56 = vector.broadcast %cst_49 : f32 to vector<4x128xf32>
    %57 = arith.maximumf %52, %56 : vector<4x128xf32>
    %c3_50 = arith.constant 3 : index
    %c0_51 = arith.constant 0 : index
    %c0_52 = arith.constant 0 : index
    %58 = vector.load %arg4[%c3_50, %c0_51, %c0_52] : memref<4x4x128xf32, #tpu.memory_space<vmem>>, vector<1x4x128xf32>
    %59 = vector.shape_cast %58 : vector<1x4x128xf32> to vector<4x128xf32>
    %60 = vector.shape_cast %57 : vector<4x128xf32> to vector<1x4x128xf32>
    tpu.vector_store %arg4[%c3_50, %c0_51, %c0_52], %60 {strides = array<i32>} : memref<4x4x128xf32, #tpu.memory_space<vmem>>, vector<1x4x128xf32>,
    %c4 = arith.constant 4 : index
    %c0_53 = arith.constant 0 : index
    %c0_54 = arith.constant 0 : index
    %61 = vector.load %arg1[%c4, %c0_53, %c0_54] : memref<5x128x128xf32, #tpu.memory_space<vmem>>, vector<1x128x128xf32>
    %62 = vector.shape_cast %61 : vector<1x128x128xf32> to vector<128x128xf32>
    %cst_55 = arith.constant dense<0.000000e+00> : vector<4x128xf32>
    %63 = tpu.matmul %57, %62, %cst_55 {dimension_numbers = #tpu.dot_dimension_numbers<[1], [0], [0], [1], [0, 0, 1, 1], [], []>} : vector<4x128xf32>, vector<128x128xf32>, vector<4x128xf32> -> vector<4x128xf32>
    %c4_56 = arith.constant 4 : index
    %c0_57 = arith.constant 0 : index
    %c0_58 = arith.constant 0 : index
    %64 = vector.load %arg2[%c4_56, %c0_57, %c0_58] : memref<5x1x128xf32, #tpu.memory_space<vmem>>, vector<1x1x128xf32>
    %65 = vector.shape_cast %64 : vector<1x1x128xf32> to vector<1x128xf32>
    %66 = vector.broadcast %65 : vector<1x128xf32> to vector<4x128xf32>
    %67 = arith.addf %63, %66 : vector<4x128xf32>
    %c4_59 = arith.constant 4 : index
    %c0_60 = arith.constant 0 : index
    %c0_61 = arith.constant 0 : index
    %68 = vector.load %arg3[%c4_59, %c0_60, %c0_61] : memref<5x4x128xf32, #tpu.memory_space<vmem>>, vector<1x4x128xf32>
    %69 = vector.shape_cast %68 : vector<1x4x128xf32> to vector<4x128xf32>
    %70 = vector.shape_cast %67 : vector<4x128xf32> to vector<1x4x128xf32>
    tpu.vector_store %arg3[%c4_59, %c0_60, %c0_61], %70 {strides = array<i32>} : memref<5x4x128xf32, #tpu.memory_space<vmem>>, vector<1x4x128xf32>,
    return
  }
}

</mosaic_0001>

<bundles_post_ra>
// kernel: neuralnet04_forward.1
= control target key start
LH: loop header
LB: loop body
LE: loop exit
PB: predicated region body
PF: predicated region fallthrough
CT: control target
= control target key end

     0   :  { %10 = vsyncpa [#allocation3], 0  ;;  %s1009_s0 = inlined_call_operand.hbm [shape: f32[4,32], index: 0, kind: input, shape index: {}]   ;;  %s1010_s1 = inlined_call_operand.hbm [shape: f32[5,128,128], index: 1, kind: input, shape index: {}]   ;;  %s1011_s2 = inlined_call_operand.hbm [shape: f32[5,1,128], index: 2, kind: input, shape index: {}]   ;;  %s1012_s3 = inlined_call_operand.vmem [shape: f32[5,4,128], index: 3, kind: output, shape index: {0}]   ;;  %s1013_s4 = inlined_call_operand.vmem [shape: f32[4,4,128], index: 4, kind: output, shape index: {1}]  }
   0x1   :  { %11 = vsyncpa [#allocation5], 0  ;;  %s861_s15 = smov [#allocation4]  }
   0x2   :  { %s27_s16 = sshll.u32 %s861_s15, 4  ;;  %s28_s16 = int_to_ptr.vmem [resolvable:$true] %s27_s16 }
   0x3   :  { %s805_s17 = scalar_lea.vmem %s28_s16, 10240  ;;  %p810_p1 = scmp.lt.s32.totalorder %s28_s16, %s28_s16 }
   0x4   :  { %p806_p0 = scmp.ne.s32.totalorder %s28_s16, %s805_s17  ;;  %p811_p2 = scmp.lt.s32.totalorder %s805_s17, %s805_s17 }
   0x6   :  { %p812_p3 = por %p811_p2, %p810_p1 }
   0x8   :  { %p813_p4 = pnand %p812_p3, %p806_p0 }
   0xa   :  { %816 = shalt.err (!%p813_p4)
}
   0xb   :  { %s862_s18 = smov 128   ;;  %s863_s19 = smov 8  }
   0xc   :  { %33 = dma.hbm_to_vmem [thread:$0]  %s1010_s1, 10240, %s28_s16, [#allocation5], %s862_s18, %s862_s18, %s863_s19  }
   0xd   :  { %s864_s22 = smov [#allocation2]   ;;  %s865_s24 = smov [#allocation6]  }
   0xe   :  { %s18_s23 = sshll.u32 %s864_s22, 4  ;;  %s39_s25 = sshll.u32 %s865_s24, 4  ;;  %s19_s23 = int_to_ptr.vmem [resolvable:$true] %s18_s23  ;;  %s40_s25 = int_to_ptr.vmem [resolvable:$true] %s39_s25 }
   0xf   :  { %s825_s26 = scalar_lea.vmem %s19_s23, 64  ;;  %p830_p6 = scmp.lt.s32.totalorder %s19_s23, %s19_s23 }
  0x10   :  { %p826_p5 = scmp.ne.s32.totalorder %s19_s23, %s825_s26  ;;  %p831_p7 = scmp.lt.s32.totalorder %s825_s26, %s825_s26 }
  0x12   :  { %p832_p8 = por %p831_p7, %p830_p6 }
  0x14   :  { %p833_p9 = pnand %p832_p8, %p826_p5 }
  0x16   :  { %836 = shalt.err (!%p833_p9)
}
  0x17   :  { %21 = dma.hbm_to_vmem [thread:$0]  %s1009_s0, 64, %s19_s23, [#allocation3]  }
  0x18   :  { %s845_s29 = scalar_lea.vmem %s40_s25, 80  ;;  %s849_s1 = scalar_lea.vmem %s40_s25, 96 }
  0x19   :  { %p846_p10 = scmp.ne.s32.totalorder %s40_s25, %s845_s29  ;;  %p850_p11 = scmp.lt.s32.totalorder %s40_s25, %s40_s25 }
  0x1a   :  { %p851_p12 = scmp.lt.s32.totalorder %s849_s1, %s845_s29 }
  0x1c   :  { %p852_p13 = por %p851_p12, %p850_p11 }
  0x1e   :  { %p853_p0 = pnand %p852_p13, %p846_p10 }
  0x20   :  { %856 = shalt.err (!%p853_p0)
}
  0x21   :  { %s866_s30 = smov 16   ;;  %s867_s5 = smov 1  }
  0x22   :  { %45 = dma.hbm_to_vmem [thread:$0]  %s1011_s2, 80, %s40_s25, [#allocation5], %s866_s30, %s866_s30, %s867_s5  }
  0x23   :  { %857 = dma.done.wait [#allocation3], 64  }
  0x24   :  { %858 = vsyncadd [#allocation3], 4294967232 }
  0x25   :  { %859 = dma.done.wait [#allocation5], 10320  }
  0x26   :  { %860 = vsyncadd [#allocation5], 4294956976  ;;  %v868_v0 = vmov 0.0   ;;  %vm869_vm0 = vmmov 0   ;;  %v59_v1 = vld [vmem:[#allocation4 + $0x18] sm:$0xff]  ;;  %v58_v2 = vld [vmem:[#allocation4 + $0x10] sm:$0xff] }
  0x27   :  { %637 = vmatprep.subr.mxu0 %v868_v0  ;;  %645 = vmatprep.mubr.msk.f32.mxu0 %vm869_vm0, %v868_v0  ;;  %v160_v3 = vld [vmem:[#allocation4 + $0xf8] sm:$0xff]  ;;  %v57_v4 = vld [vmem:[#allocation4 + $0x8] sm:$0xff]  ;;  %v159_v5 = vld [vmem:[#allocation4 + $0xf0] sm:$0xff]  ;;  %vm67_vm1 = vcmask 261120  }
  0x28   :  { %648 = vmatprep.subr.mxu1 %v868_v0  ;;  %680 = vmatprep.mubr.msk.f32.mxu1 %vm869_vm0, %v868_v0  ;;  %v158_v6 = vld [vmem:[#allocation4 + $0xe8] sm:$0xff]  ;;  %v56_v7 = vld [vmem:[#allocation4] sm:$0xff]  ;;  %v55_v8 = vld [vmem:[#allocation2] sm:$0xf] }
  0x29   :  { %638 = vmatpush3.msra.mxu0 %v59_v1  ;;  %649 = vmatpush3.msra.mxu1 %v160_v3  ;;  %v157_v9 = vld [vmem:[#allocation4 + $0xe0] sm:$0xff]  ;;  %v156_v10 = vld [vmem:[#allocation4 + $0xd8] sm:$0xff]  ;;  %v155_v11 = vld [vmem:[#allocation4 + $0xd0] sm:$0xff] }
  0x2a   :  { %639 = vmatprep.subr.mxu0 %v868_v0  ;;  %650 = vmatprep.subr.mxu1 %v868_v0  ;;  %v154_v12 = vld [vmem:[#allocation4 + $0xc8] sm:$0xff]  ;;  %v153_v13 = vld [vmem:[#allocation4 + $0xc0] sm:$0xff]  ;;  %v152_v14 = vld [vmem:[#allocation4 + $0xb8] sm:$0xff] }
  0x2b   :  { %640 = vmatpush3.msra.mxu0 %v58_v2  ;;  %651 = vmatpush3.msra.mxu1 %v159_v5  ;;  %v151_v15 = vld [vmem:[#allocation4 + $0xb0] sm:$0xff]  ;;  %v150_v16 = vld [vmem:[#allocation4 + $0xa8] sm:$0xff]  ;;  %v149_v17 = vld [vmem:[#allocation4 + $0xa0] sm:$0xff] }
  0x2c   :  { %641 = vmatprep.subr.mxu0 %v868_v0  ;;  %652 = vmatprep.subr.mxu1 %v868_v0  ;;  %v148_v18 = vld [vmem:[#allocation4 + $0x98] sm:$0xff]  ;;  %v147_v19 = vld [vmem:[#allocation4 + $0x90] sm:$0xff]  ;;  %v146_v20 = vld [vmem:[#allocation4 + $0x88] sm:$0xff] }
  0x2d   :  { %642 = vmatpush3.msra.mxu0 %v57_v4  ;;  %653 = vmatpush3.msra.mxu1 %v158_v6  ;;  %v145_v21 = vld [vmem:[#allocation4 + $0x80] sm:$0xff]  ;;  %v260_v22 = vld [vmem:[#allocation4 + $0x178] sm:$0xff]  ;;  %v259_v23 = vld [vmem:[#allocation4 + $0x170] sm:$0xff] }
  0x2e   :  { %643 = vmatprep.subr.mxu0 %v868_v0  ;;  %654 = vmatprep.subr.mxu1 %v868_v0  ;;  %v258_v24 = vld [vmem:[#allocation4 + $0x168] sm:$0xff]  ;;  %v257_v25 = vld [vmem:[#allocation4 + $0x160] sm:$0xff]  ;;  %v256_v26 = vld [vmem:[#allocation4 + $0x158] sm:$0xff] }
  0x2f   :  { %644 = vmatpush3.msra.mxu0 %v56_v7  ;;  %655 = vmatpush3.msra.mxu1 %v157_v9  ;;  %v255_v27 = vld [vmem:[#allocation4 + $0x150] sm:$0xff]  ;;  %v254_v28 = vld [vmem:[#allocation4 + $0x148] sm:$0xff]  ;;  %v253_v29 = vld [vmem:[#allocation4 + $0x140] sm:$0xff] }
  0x30   :  { %646 = vmatmul.mubr.msk.f32.vlgmr.msra.gmra.mxu0 %vm67_vm1, %v55_v8  ;;  %656 = vmatprep.subr.mxu1 %v868_v0  ;;  %v252_v30 = vld [vmem:[#allocation4 + $0x138] sm:$0xff]  ;;  %v251_v31 = vld [vmem:[#allocation4 + $0x130] sm:$0xff]  ;;  %v250_v32 = vld [vmem:[#allocation4 + $0x128] sm:$0xff] }
  0x31   :  { %683 = vmatprep.subr.mxu0 %v868_v0  ;;  %657 = vmatpush3.msra.mxu1 %v156_v10  ;;  %v249_v33 = vld [vmem:[#allocation4 + $0x120] sm:$0xff]  ;;  %v248_v34 = vld [vmem:[#allocation4 + $0x118] sm:$0xff]  ;;  %v247_v40 = vld [vmem:[#allocation4 + $0x110] sm:$0xff] }
  0x32   :  { %715 = vmatprep.mubr.msk.f32.mxu0 %vm869_vm0, %v868_v0  ;;  %658 = vmatprep.subr.mxu1 %v868_v0  ;;  %v551_v35 = vld [vmem:[#allocation6] ss:$0 sm:$0xff]  ;;  %v246_v41 = vld [vmem:[#allocation4 + $0x108] sm:$0xff]  ;;  %v360_v43 = vld [vmem:[#allocation4 + $0x1f8] sm:$0xff] }
  0x33   :  { %659 = vmatpush3.msra.mxu1 %v155_v11  ;;  %684 = vmatpush3.msra.mxu0 %v260_v22  ;;  %v245_v42 = vld [vmem:[#allocation4 + $0x100] sm:$0xff]  ;;  %v359_v44 = vld [vmem:[#allocation4 + $0x1f0] sm:$0xff]  ;;  %v358_v45 = vld [vmem:[#allocation4 + $0x1e8] sm:$0xff] }
  0x34   :  { %660 = vmatprep.subr.mxu1 %v868_v0  ;;  %685 = vmatprep.subr.mxu0 %v868_v0  ;;  %v357_v46 = vld [vmem:[#allocation4 + $0x1e0] sm:$0xff]  ;;  %v356_v47 = vld [vmem:[#allocation4 + $0x1d8] sm:$0xff]  ;;  %v355_v48 = vld [vmem:[#allocation4 + $0x1d0] sm:$0xff] }
  0x35   :  { %661 = vmatpush3.msra.mxu1 %v154_v12  ;;  %686 = vmatpush3.msra.mxu0 %v259_v23  ;;  %v354_v49 = vld [vmem:[#allocation4 + $0x1c8] sm:$0xff]  ;;  %v353_v50 = vld [vmem:[#allocation4 + $0x1c0] sm:$0xff]  ;;  %v352_v51 = vld [vmem:[#allocation4 + $0x1b8] sm:$0xff] }
  0x36   :  { %662 = vmatprep.subr.mxu1 %v868_v0  ;;  %687 = vmatprep.subr.mxu0 %v868_v0  ;;  %v351_v52 = vld [vmem:[#allocation4 + $0x1b0] sm:$0xff]  ;;  %v350_v53 = vld [vmem:[#allocation4 + $0x1a8] sm:$0xff]  ;;  %v349_v54 = vld [vmem:[#allocation4 + $0x1a0] sm:$0xff] }
  0x37   :  { %663 = vmatpush3.msra.mxu1 %v153_v13  ;;  %688 = vmatpush3.msra.mxu0 %v258_v24  ;;  %v348_v55 = vld [vmem:[#allocation4 + $0x198] sm:$0xff]  ;;  %v553_v56 = vld [vmem:[#allocation6 + $0x1] ss:$0 sm:$0xff]  ;;  %v347_v61 = vld [vmem:[#allocation4 + $0x190] sm:$0xff] }
  0x38   :  { %664 = vmatprep.subr.mxu1 %v868_v0  ;;  %689 = vmatprep.subr.mxu0 %v868_v0  ;;  %v346_v62 = vld [vmem:[#allocation4 + $0x188] sm:$0xff]  ;;  %v345_v63 = vld [vmem:[#allocation4 + $0x180] sm:$0xff]  ;;  %v460_v1 = vld [vmem:[#allocation4 + $0x278] sm:$0xff] }
  0x39   :  { %665 = vmatpush3.msra.mxu1 %v152_v14  ;;  %690 = vmatpush3.msra.mxu0 %v257_v25  ;;  %v459_v2 = vld [vmem:[#allocation4 + $0x270] sm:$0xff]  ;;  %v458_v3 = vld [vmem:[#allocation4 + $0x268] sm:$0xff]  ;;  %v457_v4 = vld [vmem:[#allocation4 + $0x260] sm:$0xff] }
  0x3a   :  { %666 = vmatprep.subr.mxu1 %v868_v0  ;;  %691 = vmatprep.subr.mxu0 %v868_v0  ;;  %v456_v5 = vld [vmem:[#allocation4 + $0x258] sm:$0xff]  ;;  %v455_v6 = vld [vmem:[#allocation4 + $0x250] sm:$0xff]  ;;  %v454_v7 = vld [vmem:[#allocation4 + $0x248] sm:$0xff] }
  0x3b   :  { %667 = vmatpush3.msra.mxu1 %v151_v15  ;;  %692 = vmatpush3.msra.mxu0 %v256_v26  ;;  %v453_v8 = vld [vmem:[#allocation4 + $0x240] sm:$0xff]  ;;  %v452_v9 = vld [vmem:[#allocation4 + $0x238] sm:$0xff]  ;;  %v451_v10 = vld [vmem:[#allocation4 + $0x230] sm:$0xff] }
  0x3c   :  { %668 = vmatprep.subr.mxu1 %v868_v0  ;;  %693 = vmatprep.subr.mxu0 %v868_v0  ;;  %v450_v11 = vld [vmem:[#allocation4 + $0x228] sm:$0xff]  ;;  %v449_v12 = vld [vmem:[#allocation4 + $0x220] sm:$0xff]  ;;  %v448_v13 = vld [vmem:[#allocation4 + $0x218] sm:$0xff] }
  0x3d   :  { %669 = vmatpush3.msra.mxu1 %v150_v16  ;;  %694 = vmatpush3.msra.mxu0 %v255_v27  ;;  %v556_v14 = vld [vmem:[#allocation6 + $0x2] ss:$0 sm:$0xff]  ;;  %v559_v22 = vld [vmem:[#allocation6 + $0x3] ss:$0 sm:$0xff]  ;;  %v562_v27 = vld [vmem:[#allocation6 + $0x4] ss:$0 sm:$0xff] }
  0x3e   :  { %670 = vmatprep.subr.mxu1 %v868_v0  ;;  %695 = vmatprep.subr.mxu0 %v868_v0 }
  0x3f   :  { %671 = vmatpush3.msra.mxu1 %v149_v17  ;;  %696 = vmatpush3.msra.mxu0 %v254_v28 }
  0x40   :  { %672 = vmatprep.subr.mxu1 %v868_v0  ;;  %697 = vmatprep.subr.mxu0 %v868_v0 }
  0x41   :  { %673 = vmatpush3.msra.mxu1 %v148_v18  ;;  %698 = vmatpush3.msra.mxu0 %v253_v29 }
  0x42   :  { %674 = vmatprep.subr.mxu1 %v868_v0  ;;  %699 = vmatprep.subr.mxu0 %v868_v0 }
  0x43   :  { %675 = vmatpush3.msra.mxu1 %v147_v19  ;;  %700 = vmatpush3.msra.mxu0 %v252_v30  ;;  %v447_v19 = vld [vmem:[#allocation4 + $0x210] sm:$0xff] }
  0x44   :  { %676 = vmatprep.subr.mxu1 %v868_v0  ;;  %701 = vmatprep.subr.mxu0 %v868_v0 }
  0x45   :  { %677 = vmatpush3.msra.mxu1 %v146_v20  ;;  %702 = vmatpush3.msra.mxu0 %v251_v31  ;;  %v446_v20 = vld [vmem:[#allocation4 + $0x208] sm:$0xff] }
  0x46   :  { %678 = vmatprep.subr.mxu1 %v868_v0  ;;  %703 = vmatprep.subr.mxu0 %v868_v0 }
  0x47   :  { %679 = vmatpush3.msra.mxu1 %v145_v21  ;;  %704 = vmatpush3.msra.mxu0 %v250_v32  ;;  %v445_v21 = vld [vmem:[#allocation4 + $0x200] sm:$0xff] }
  0x48   :  { %718 = vmatprep.subr.mxu1 %v868_v0  ;;  %705 = vmatprep.subr.mxu0 %v868_v0 }
  0x49   :  { %706 = vmatpush3.msra.mxu0 %v249_v33 }
  0x4a   :  { %707 = vmatprep.subr.mxu0 %v868_v0 }
  0x4b   :  { %708 = vmatpush3.msra.mxu0 %v248_v34 }
  0x4c   :  { %709 = vmatprep.subr.mxu0 %v868_v0 }
  0x4d   :  { %710 = vmatpush3.msra.mxu0 %v247_v40 }
  0x4e   :  { %711 = vmatprep.subr.mxu0 %v868_v0 }
  0x4f   :  { %712 = vmatpush3.msra.mxu0 %v246_v41 }
  0x50   :  { %713 = vmatprep.subr.mxu0 %v868_v0 }
  0x51   :  { %714 = vmatpush3.msra.mxu0 %v245_v42 }
  0x52   :  { %753 = vmatprep.subr.mxu0 %v868_v0 }
  0xf0   :  { %v137_v36 = vpop.f32.mrf.mxu0 }
  0xf1   :  { %v138_v37 = vadd.f32 %v551_v35, %v137_v36 }
  0xf2   :  { %v647_v38 = vpop.f32.mrf.mxu0 }
  0xf3   :  { %141 = vst [vmem:[%s1012_s3] sm:$0xf] %v138_v37  ;;  %v142_v39 = vmax.f32 %v138_v37, 0.0 }
  0xf5   :  { %143 = vst [vmem:[%s1013_s4] sm:$0xf] %v142_v39  ;;  %681 = vmatmul.mubr.f32.vlgmr.msra.gmra.mxu1 %v142_v39 }
  0xf6   :  { %750 = vmatprep.mubr.msk.f32.mxu1 %vm869_vm0, %v868_v0  ;;  %719 = vmatpush3.msra.mxu1 %v360_v43 }
  0xf7   :  { %720 = vmatprep.subr.mxu1 %v868_v0 }
  0xf8   :  { %721 = vmatpush3.msra.mxu1 %v359_v44 }
  0xf9   :  { %722 = vmatprep.subr.mxu1 %v868_v0 }
  0xfa   :  { %723 = vmatpush3.msra.mxu1 %v358_v45 }
  0xfb   :  { %724 = vmatprep.subr.mxu1 %v868_v0 }
  0xfc   :  { %725 = vmatpush3.msra.mxu1 %v357_v46 }
  0xfd   :  { %726 = vmatprep.subr.mxu1 %v868_v0 }
  0xfe   :  { %727 = vmatpush3.msra.mxu1 %v356_v47 }
  0xff   :  { %728 = vmatprep.subr.mxu1 %v868_v0 }
 0x100   :  { %729 = vmatpush3.msra.mxu1 %v355_v48 }
 0x101   :  { %730 = vmatprep.subr.mxu1 %v868_v0 }
 0x102   :  { %731 = vmatpush3.msra.mxu1 %v354_v49 }
 0x103   :  { %732 = vmatprep.subr.mxu1 %v868_v0 }
 0x104   :  { %733 = vmatpush3.msra.mxu1 %v353_v50 }
 0x105   :  { %734 = vmatprep.subr.mxu1 %v868_v0 }
 0x106   :  { %735 = vmatpush3.msra.mxu1 %v352_v51 }
 0x107   :  { %736 = vmatprep.subr.mxu1 %v868_v0 }
 0x108   :  { %737 = vmatpush3.msra.mxu1 %v351_v52 }
 0x109   :  { %738 = vmatprep.subr.mxu1 %v868_v0 }
 0x10a   :  { %739 = vmatpush3.msra.mxu1 %v350_v53 }
 0x10b   :  { %740 = vmatprep.subr.mxu1 %v868_v0 }
 0x10c   :  { %741 = vmatpush3.msra.mxu1 %v349_v54 }
 0x10d   :  { %742 = vmatprep.subr.mxu1 %v868_v0 }
 0x10e   :  { %743 = vmatpush3.msra.mxu1 %v348_v55 }
 0x10f   :  { %744 = vmatprep.subr.mxu1 %v868_v0 }
 0x110   :  { %745 = vmatpush3.msra.mxu1 %v347_v61 }
 0x111   :  { %746 = vmatprep.subr.mxu1 %v868_v0 }
 0x112   :  { %747 = vmatpush3.msra.mxu1 %v346_v62 }
 0x113   :  { %748 = vmatprep.subr.mxu1 %v868_v0 }
 0x114   :  { %749 = vmatpush3.msra.mxu1 %v345_v63 }
 0x1b5   :  { %v235_v57 = vpop.f32.mrf.mxu1 }
 0x1b6   :  { %v236_v58 = vadd.f32 %v553_v56, %v235_v57 }
 0x1b7   :  { %v682_v59 = vpop.f32.mrf.mxu1 }
 0x1b8   :  { %554 = vst [vmem:[%s1012_s3 + $0x4] sm:$0xf] %v236_v58  ;;  %v241_v60 = vmax.f32 %v236_v58, 0.0 }
 0x1ba   :  { %555 = vst [vmem:[%s1013_s4 + $0x4] sm:$0xf] %v241_v60  ;;  %716 = vmatmul.mubr.f32.vlgmr.msra.gmra.mxu0 %v241_v60 }
 0x1bb   :  { %785 = vmatprep.mubr.msk.f32.mxu0 %vm869_vm0, %v868_v0  ;;  %754 = vmatpush3.msra.mxu0 %v460_v1 }
 0x1bc   :  { %755 = vmatprep.subr.mxu0 %v868_v0 }
 0x1bd   :  { %756 = vmatpush3.msra.mxu0 %v459_v2 }
 0x1be   :  { %757 = vmatprep.subr.mxu0 %v868_v0 }
 0x1bf   :  { %758 = vmatpush3.msra.mxu0 %v458_v3 }
 0x1c0   :  { %759 = vmatprep.subr.mxu0 %v868_v0 }
 0x1c1   :  { %760 = vmatpush3.msra.mxu0 %v457_v4 }
 0x1c2   :  { %761 = vmatprep.subr.mxu0 %v868_v0 }
 0x1c3   :  { %762 = vmatpush3.msra.mxu0 %v456_v5 }
 0x1c4   :  { %763 = vmatprep.subr.mxu0 %v868_v0 }
 0x1c5   :  { %764 = vmatpush3.msra.mxu0 %v455_v6 }
 0x1c6   :  { %765 = vmatprep.subr.mxu0 %v868_v0 }
 0x1c7   :  { %766 = vmatpush3.msra.mxu0 %v454_v7 }
 0x1c8   :  { %767 = vmatprep.subr.mxu0 %v868_v0 }
 0x1c9   :  { %768 = vmatpush3.msra.mxu0 %v453_v8 }
 0x1ca   :  { %769 = vmatprep.subr.mxu0 %v868_v0 }
 0x1cb   :  { %770 = vmatpush3.msra.mxu0 %v452_v9 }
 0x1cc   :  { %771 = vmatprep.subr.mxu0 %v868_v0 }
 0x1cd   :  { %772 = vmatpush3.msra.mxu0 %v451_v10 }
 0x1ce   :  { %773 = vmatprep.subr.mxu0 %v868_v0 }
 0x1cf   :  { %774 = vmatpush3.msra.mxu0 %v450_v11 }
 0x1d0   :  { %775 = vmatprep.subr.mxu0 %v868_v0 }
 0x1d1   :  { %776 = vmatpush3.msra.mxu0 %v449_v12 }
 0x1d2   :  { %777 = vmatprep.subr.mxu0 %v868_v0 }
 0x1d3   :  { %778 = vmatpush3.msra.mxu0 %v448_v13 }
 0x1d4   :  { %779 = vmatprep.subr.mxu0 %v868_v0 }
 0x1d5   :  { %780 = vmatpush3.msra.mxu0 %v447_v19 }
 0x1d6   :  { %781 = vmatprep.subr.mxu0 %v868_v0 }
 0x1d7   :  { %782 = vmatpush3.msra.mxu0 %v446_v20 }
 0x1d8   :  { %783 = vmatprep.subr.mxu0 %v868_v0 }
 0x1d9   :  { %784 = vmatpush3.msra.mxu0 %v445_v21 }
 0x27a   :  { %v335_v15 = vpop.f32.mrf.mxu0 }
 0x27b   :  { %v336_v16 = vadd.f32 %v556_v14, %v335_v15 }
 0x27c   :  { %v717_v17 = vpop.f32.mrf.mxu0 }
 0x27d   :  { %557 = vst [vmem:[%s1012_s3 + $0x8] sm:$0xf] %v336_v16  ;;  %v341_v18 = vmax.f32 %v336_v16, 0.0 }
 0x27f   :  { %558 = vst [vmem:[%s1013_s4 + $0x8] sm:$0xf] %v341_v18  ;;  %751 = vmatmul.mubr.f32.vlgmr.msra.gmra.mxu1 %v341_v18 }
 0x33f   :  { %v435_v23 = vpop.f32.mrf.mxu1 }
 0x340   :  { %v436_v24 = vadd.f32 %v559_v22, %v435_v23 }
 0x341   :  { %v752_v25 = vpop.f32.mrf.mxu1 }
 0x342   :  { %560 = vst [vmem:[%s1012_s3 + $0xc] sm:$0xf] %v436_v24  ;;  %v441_v26 = vmax.f32 %v436_v24, 0.0 }
 0x344   :  { %561 = vst [vmem:[%s1013_s4 + $0xc] sm:$0xf] %v441_v26  ;;  %786 = vmatmul.mubr.f32.vlgmr.msra.gmra.mxu0 %v441_v26 }
 0x404   :  { %v535_v28 = vpop.f32.mrf.mxu0 }
 0x405   :  { %v536_v29 = vadd.f32 %v562_v27, %v535_v28 }
 0x406   :  { %v787_v0 = vpop.f32.mrf.mxu0 }
 0x407   :  { %563 = vst [vmem:[%s1012_s3 + $0x10] sm:$0xf] %v536_v29 }
 0x408   :  { %549 = vsyncpa [#allocation3], 1 }
 0x409   :  { %550 = vsyncpa [#allocation5], 1 }

</bundles_post_ra>
